<compile_context>
chip_gen: v5e
topology: v5e:2x2
jax: 0.10.0
libtpu: 0.0.40
codegen_flags: <defaults>
</compile_context>

<pallas_src>
import jax
import jax.numpy as jnp
from jax import lax
from jax.experimental import pallas as pl
from jax.experimental.pallas import tpu as pltpu


def _round_up(x, m):
    return ((x + m - 1) // m) * m


def _logreg_kernel(x_ref, w_ref, b_ref, o_ref):
    # x_ref: [TB, D_in]; w_ref: [TN, D_in] (PyTorch [D_out, D_in] layout,
    # tiled over D_out); b_ref: [1, TN]; o_ref: [TB, TN].
    #
    # Contract dim 1 of both operands (x @ W^T). This is the q.k^T pattern:
    # Mosaic lowers it to an MXU matmul with transposed RHS, without a
    # per-grid-step vxpose/relayout of the grid-invariant weight block.
    z = lax.dot_general(
        x_ref[...], w_ref[...],
        dimension_numbers=(((1,), (1,)), ((), ())),
        preferred_element_type=jnp.float32,
    )
    z = z + b_ref[...].astype(jnp.float32)        # broadcast bias over rows
    o_ref[...] = jax.nn.sigmoid(z).astype(o_ref.dtype)


def logistic_regression_forward(x, weight, bias, *,
                                target_tile_bytes=2 * 1024 * 1024,
                                vmem_budget_bytes=32 * 1024 * 1024):
    """sigmoid(x @ weight.T + bias).

    x: [B, D_in]; weight: [D_out, D_in] (PyTorch nn.Linear layout); bias: [D_out].
    """
    B, D_in = x.shape
    D_out = weight.shape[0]
    b2 = bias.reshape(1, D_out)
    itemsize = jnp.dtype(x.dtype).itemsize

    # ---- D_out (lane) tiling ------------------------------------------------
    # Keep the whole weight VMEM-resident while it fits (fetched once, reused
    # by every batch tile); otherwise stream it in 512-row D_out tiles so the
    # footprint never blows v7x's 64 MiB VMEM.
    lane_din = _round_up(D_in, 128)                        # lane padding of x/w tiles
    full_w_vmem = 2 * _round_up(D_out, 8) * lane_din * itemsize   # 2x: double-buffered
    tn = D_out if full_w_vmem <= vmem_budget_bytes // 2 else 512
    num_n = pl.cdiv(D_out, tn)
    w_vmem = 2 * _round_up(min(tn, D_out), 8) * lane_din * itemsize
    lane_dout = _round_up(min(tn, D_out), 128)

    # ---- batch (sublane) tiling ---------------------------------------------
    # Per-row VMEM cost of the double-buffered x + out tiles, incl. lane padding.
    row_bytes = 2 * (lane_din + lane_dout) * itemsize
    # Big enough to amortize per-grid-step overhead (scales inversely with D_in)...
    tb = max(8, (target_tile_bytes // row_bytes) // 8 * 8)
    # ...but within the VMEM budget...
    avail = max(8 * row_bytes, vmem_budget_bytes - w_vmem)
    tb = min(tb, max(8, (avail // row_bytes) // 8 * 8))
    # ...and small enough that the grid has >= ~4 batch steps when B allows,
    # so the x DMA is pipelined and both v7x TensorCores get work.
    tb = min(tb, _round_up(pl.cdiv(B, 4), 8))
    tb = min(tb, _round_up(B, 8))
    num_b = pl.cdiv(B, tb)

    # Estimated scoped-VMEM use -> compiler limit (headroom, capped at 64 MiB).
    est_vmem = tb * row_bytes + w_vmem + 2 * 8 * lane_dout * itemsize
    vmem_limit = int(min(64 * 1024 * 1024, max(32 * 1024 * 1024, 2 * est_vmem)))

    return pl.pallas_call(
        _logreg_kernel,
        out_shape=jax.ShapeDtypeStruct((B, D_out), x.dtype),
        grid_spec=pltpu.PrefetchScalarGridSpec(
            num_scalar_prefetch=0,
            grid=(num_b, num_n),
            in_specs=[
                # x: one batch tile per i, independent of j (not re-fetched
                # across the inner j loop).
                pl.BlockSpec((tb, D_in), lambda i, j: (i, 0)),
                # weight / bias: depend only on j; with tn == D_out the block
                # index is constant -> DMA'd once, VMEM-resident for all tiles.
                pl.BlockSpec((tn, D_in), lambda i, j: (j, 0)),
                pl.BlockSpec((1, tn), lambda i, j: (0, j)),
            ],
            out_specs=pl.BlockSpec((tb, tn), lambda i, j: (i, j)),
        ),
        compiler_params=pltpu.CompilerParams(
            # Both axes are embarrassingly parallel -> megacore sharding on v7x.
            dimension_semantics=("parallel", "parallel"),
            vmem_limit_bytes=vmem_limit,
        ),
    )(x, weight, b2)


if __name__ == "__main__":
    # Small shapes consistent with the module: batch=8, input_dim=32, output_dim=16
    B, D_in, D_out = 8, 32, 16

    key = jax.random.PRNGKey(0)
    kx, kw, kb = jax.random.split(key, 3)

    x = jax.random.normal(kx, (B, D_in), dtype=jnp.float32)
    # Mimic torch.nn.Linear init: uniform(-1/sqrt(D_in), 1/sqrt(D_in))
    bound = 1.0 / (D_in ** 0.5)
    weight = jax.random.uniform(kw, (D_out, D_in), minval=-bound, maxval=bound,
                                dtype=jnp.float32)
    bias = jax.random.uniform(kb, (D_out,), minval=-bound, maxval=bound,
                              dtype=jnp.float32)

    out = logistic_regression_forward(x, weight, bias)
    out = jax.block_until_ready(out)

    # Reference check in plain JAX
    ref = jax.nn.sigmoid(x @ weight.T + bias)
    assert out.shape == (B, D_out)
    assert jnp.allclose(out, ref, atol=1e-5, rtol=1e-5)

    print("KERNEL_OK")
</pallas_src>

<mosaic_0001>
module attributes {stable_mosaic.version = 11 : i64} {
  func.func @_logreg_kernel(%arg0: i32, %arg1: i32, %arg2: memref<8x32xf32, #tpu.memory_space<vmem>>, %arg3: memref<16x32xf32, #tpu.memory_space<vmem>>, %arg4: memref<1x16xf32, #tpu.memory_space<vmem>>, %arg5: memref<8x16xf32, #tpu.memory_space<vmem>>) attributes {dimension_semantics = [#tpu.dimension_semantics<parallel>, #tpu.dimension_semantics<parallel>], iteration_bounds = array<i64: 1, 1>, scalar_prefetch = 0 : i64, scratch_operands = 0 : i64, tpu.core_type = #tpu.core_type<tc>, window_params = [{transform_indices = @transform_0, window_bounds = array<i64: 8, 32>}, {transform_indices = @transform_1, window_bounds = array<i64: 16, 32>}, {transform_indices = @transform_2, window_bounds = array<i64: 1, 16>}, {transform_indices = @transform_3, window_bounds = array<i64: 8, 16>}]} {
    %c0 = arith.constant 0 : index
    %c0_0 = arith.constant 0 : index
    %0 = vector.load %arg2[%c0, %c0_0] : memref<8x32xf32, #tpu.memory_space<vmem>>, vector<8x32xf32>
    %c0_1 = arith.constant 0 : index
    %c0_2 = arith.constant 0 : index
    %1 = vector.load %arg3[%c0_1, %c0_2] : memref<16x32xf32, #tpu.memory_space<vmem>>, vector<16x32xf32>
    %cst = arith.constant dense<0.000000e+00> : vector<8x16xf32>
    %2 = tpu.matmul %0, %1, %cst {dimension_numbers = #tpu.dot_dimension_numbers<[1], [1], [0], [0], [0, 0, 1, 0], [], []>} : vector<8x32xf32>, vector<16x32xf32>, vector<8x16xf32> -> vector<8x16xf32>
    %c0_3 = arith.constant 0 : index
    %c0_4 = arith.constant 0 : index
    %3 = vector.load %arg4[%c0_3, %c0_4] : memref<1x16xf32, #tpu.memory_space<vmem>>, vector<1x16xf32>
    %4 = vector.broadcast %3 : vector<1x16xf32> to vector<8x16xf32>
    %5 = arith.addf %2, %4 : vector<8x16xf32>
    %6 = arith.negf %5 : vector<8x16xf32>
    %7 = math.exp %6 : vector<8x16xf32>
    %cst_5 = arith.constant 1.000000e+00 : f32
    %8 = vector.broadcast %cst_5 : f32 to vector<8x16xf32>
    %9 = arith.addf %8, %7 : vector<8x16xf32>
    %10 = arith.divf %8, %9 : vector<8x16xf32>
    %c0_6 = arith.constant 0 : index
    %c0_7 = arith.constant 0 : index
    %11 = vector.load %arg5[%c0_6, %c0_7] : memref<8x16xf32, #tpu.memory_space<vmem>>, vector<8x16xf32>
    tpu.vector_store %arg5[%c0_6, %c0_7], %10 {strides = array<i32>} : memref<8x16xf32, #tpu.memory_space<vmem>>, vector<8x16xf32>,
    return
  }
  func.func @transform_0(%arg0: i32, %arg1: i32) -> (i32, i32) {
    %c0_i32 = arith.constant 0 : i32
    %c0_i32_0 = arith.constant 0 : i32
    return %arg0, %c0_i32 : i32, i32
  }
  func.func @transform_1(%arg0: i32, %arg1: i32) -> (i32, i32) {
    %c0_i32 = arith.constant 0 : i32
    %c0_i32_0 = arith.constant 0 : i32
    return %arg1, %c0_i32 : i32, i32
  }
  func.func @transform_2(%arg0: i32, %arg1: i32) -> (i32, i32) {
    %c0_i32 = arith.constant 0 : i32
    %c0_i32_0 = arith.constant 0 : i32
    return %c0_i32, %arg1 : i32, i32
  }
  func.func @transform_3(%arg0: i32, %arg1: i32) -> (i32, i32) {
    %c0_i32 = arith.constant 0 : i32
    return %arg0, %arg1 : i32, i32
  }
}

</mosaic_0001>

<bundles_post_ra>
// kernel: tpu_custom_call.1
= control target key start
LH: loop header
LB: loop body
LE: loop exit
PB: predicated region body
PF: predicated region fallthrough
CT: control target
= control target key end

     0   :  { %8 = vsyncpa [#allocation3], 0  ;;  %s250_s0 = inlined_call_operand.hbm [shape: f32[8,32], index: 0, kind: input, shape index: {}]   ;;  %s251_s1 = inlined_call_operand.hbm [shape: f32[16,32], index: 1, kind: input, shape index: {}]   ;;  %s252_s2 = inlined_call_operand.vmem [shape: f32[1,16], index: 2, kind: input, shape index: {}]   ;;  %s253_s3 = inlined_call_operand.hbm [shape: f32[8,16], index: 3, kind: output, shape index: {}]  }
   0x1   :  { %9 = vsyncpa [#allocation6], 0 }
   0x2   :  { %10 = vsyncpa [#allocation4], 0  ;;  %s16_s14 = sshll.u32 %s250_s0, 4  ;;  %s213_s15 = smov [#allocation2]   ;;  %s17_s14 = int_to_ptr.hbm [resolvable:$true] %s16_s14 }
   0x3   :  { %s18_s16 = sshll.u32 %s213_s15, 4  ;;  %s26_s19 = sshll.u32 %s251_s1, 4  ;;  %s19_s16 = int_to_ptr.vmem [resolvable:$true] %s18_s16  ;;  %s27_s19 = int_to_ptr.hbm [resolvable:$true] %s26_s19 }
   0x4   :  { %21 = dma.hbm_to_vmem [thread:$0]  %s17_s14, 128, %s19_s16, [#allocation3]  }
   0x5   :  { %s214_s20 = smov [#allocation5]   ;;  %s215_s22 = smov 128  }
   0x6   :  { %s28_s21 = sshll.u32 %s214_s20, 4  ;;  %s216_s23 = smov 8   ;;  %s29_s21 = int_to_ptr.vmem [resolvable:$true] %s28_s21 }
   0x7   :  { %34 = dma.hbm_to_vmem [thread:$0]  %s27_s19, 256, %s29_s21, [#allocation6], %s215_s22, %s215_s22, %s216_s23  }
   0x8   :  { %207 = dma.done.wait [#allocation3], 128  }
   0x9   :  { %208 = vsyncadd [#allocation3], 4294967168 }
   0xa   :  { %209 = dma.done.wait [#allocation6], 256  }
   0xb   :  { %210 = vsyncadd [#allocation6], 4294967040  ;;  %vm52_vm0 = vcmask 261120   ;;  %v47_v0 = vld [vmem:[#allocation5 + $0x8] sm:$0xff]  ;;  %v46_v1 = vld [vmem:[#allocation5] sm:$0xff]  ;;  %s217_s24 = smov [#allocation7]  }
   0xc   :  { %121 = vmatpush.xpose.msk.msra.mxu0 %vm52_vm0, %v47_v0  ;;  %v45_v2 = vld [vmem:[#allocation2] sm:$0xff]  ;;  %s108_s25 = sshll.u32 %s217_s24, 4  ;;  %vm101_vm4 = vcmask 130048   ;;  %s109_s25 = int_to_ptr.vmem [resolvable:$true] %s108_s25 }
   0xd   :  { %v130_v3 = vld [vmem:[%s252_s2] ss:$0 sm:$0xff]  ;;  %s110_s2 = sshll.u32 %s253_s3, 4  ;;  %s111_s2 = int_to_ptr.hbm [resolvable:$true] %s110_s2 }
  0x10   :  { %122 = vmatpush.xpose.msk.msra.mxu0 %vm52_vm0, %v46_v1 }
  0x13   :  { %123 = vmatmul.msk.f32.vlgmr.msra.gmra.mxu0 %vm52_vm0, %v45_v2 }
  0x90   :  { %v79_v4 = vpop.f32.mrf.mxu0 }
  0x91   :  { %v80_v5 = vadd.f32 %v130_v3, %v79_v4 }
  0x93   :  { %v124_v6 = vmul.f32 -1.442695, %v80_v5 }
  0x95   :  { %131 = vpow2.f32 %v124_v6 }
  0x9b   :  { %v132_v7 = vpop.eup %131 }
  0x9c   :  { %v85_v8 = vadd.f32 1.0, %v132_v7 }
  0x9e   :  { %133 = vrcp.f32 %v85_v8  ;;  %v97_v12 = vand.u32 2147483648, %v85_v8  ;;  %v95_v14 = vand.u32 2147483647, %v85_v8  ;;  %vm91_vm2 = vweird.f32 %v85_v8 }
  0xa0   :  { %v98_v16 = vor.u32 1.1754944e-38, %v97_v12  ;;  %vm96_vm5 = vcmp.eq.f32.partialorder %v95_v14, 8.507059e+37 }
  0xa4   :  { %v134_v9 = vpop.eup %133 }
  0xa5   :  { %v87_v10 = vmul.f32 %v134_v9, %v85_v8  ;;  %vm92_vm1 = vweird.f32 %v134_v9 }
  0xa6   :  { %vm93_vm3 = vmor %vm91_vm2, %vm92_vm1 }
  0xa7   :  { %v88_v11 = vsub.f32 1.0, %v87_v10 }
  0xa9   :  { %v89_v13 = vmul.f32 %v134_v9, %v88_v11 }
  0xab   :  { %v90_v15 = vadd.f32 %v134_v9, %v89_v13 }
  0xad   :  { %v94_v17 = vsel %vm93_vm3, %v134_v9, %v90_v15 }
  0xae   :  { %v99_v18 = vsel %vm96_vm5, %v98_v16, %v94_v17 }
  0xaf   :  { %102 = vst.msk [vmem:[#allocation7] sm:$0xff] %vm101_vm4, %v99_v18 }
  0xb0   :  { %113 = dma.vmem_to_hbm [thread:$0]  %s109_s25, 128, %s111_s2, [#allocation4]  }
  0xb1   :  { %211 = dma.done.wait [#allocation4], 128  }
  0xb2   :  { %212 = vsyncadd [#allocation4], 4294967168 }
  0xb3   :  { %118 = vsyncpa [#allocation3], 1 }
  0xb4   :  { %119 = vsyncpa [#allocation6], 1 }
  0xb5   :  { %120 = vsyncpa [#allocation4], 1 }

</bundles_post_ra>
